<compile_context>
chip_gen: v5e
topology: v5e:2x2
jax: 0.10.0
libtpu: 0.0.40
codegen_flags: <defaults>
</compile_context>

<pallas_src>
import jax
import jax.numpy as jnp
from jax.experimental import pallas as pl
from jax.experimental.pallas import tpu as pltpu

DIMS = (260, 120, 40, 20, 10, 1)


def _mlp_kernel(x_ref,
                w1_ref, b1_ref,
                w2_ref, b2_ref,
                w3_ref, b3_ref,
                w4_ref, b4_ref,
                w5_ref, b5_ref,
                o_ref):
    # One batch tile per grid step; weights/biases are VMEM-resident (constant
    # index_map). Dots use bf16 inputs on the MXU with f32 accumulation.
    h = x_ref[...]  # bf16 [TB, 260]
    h = jnp.maximum(
        jnp.dot(h, w1_ref[...], preferred_element_type=jnp.float32) + b1_ref[...],
        0.0)
    h = jnp.maximum(
        jnp.dot(h.astype(jnp.bfloat16), w2_ref[...],
                preferred_element_type=jnp.float32) + b2_ref[...], 0.0)
    h = jnp.maximum(
        jnp.dot(h.astype(jnp.bfloat16), w3_ref[...],
                preferred_element_type=jnp.float32) + b3_ref[...], 0.0)
    h = jnp.maximum(
        jnp.dot(h.astype(jnp.bfloat16), w4_ref[...],
                preferred_element_type=jnp.float32) + b4_ref[...], 0.0)
    # Final layer: no ReLU.
    # TODO(synk): tail layers (20->10->1) could be VPU MACs to skip two tiny MXU
    # pushes per tile on v5e/v6e; skipped for clarity (single-digit % at best).
    o_ref[...] = (
        jnp.dot(h.astype(jnp.bfloat16), w5_ref[...],
                preferred_element_type=jnp.float32) + b5_ref[...]
    ).astype(o_ref.dtype)


def _round_up(n, m):
    return ((n + m - 1) // m) * m


def simplenet_forward(x, params, *, tb=256):
    """x: [B, 260] float32; params: list of (w [in,out] f32, b [1,out] f32)."""
    B, F = x.shape
    assert F == DIMS[0], (B, F)

    # Batch tile: fill the MXU M dimension when the batch allows, keep it a
    # multiple of 8 sublanes, never exceed the padded batch.
    tb = min(tb, _round_up(B, 8))
    b_pad = _round_up(B, tb)
    if b_pad != B:
        x = jnp.pad(x, ((0, b_pad - B), (0, 0)))
    n_tiles = b_pad // tb

    # bf16 MXU inputs; halves HBM traffic for the streamed activation tiles.
    x_bf16 = x.astype(jnp.bfloat16)
    flat = []
    for w, b in params:
        flat.extend([w.astype(jnp.bfloat16), b.astype(jnp.float32)])

    x_spec = pl.BlockSpec((tb, DIMS[0]), lambda i: (i, 0))
    # Full-extent blocks + constant index_map -> DMA'd once, VMEM-resident.
    param_specs = []
    for w, b in params:
        param_specs.append(pl.BlockSpec(w.shape, lambda i: (0, 0)))
        param_specs.append(pl.BlockSpec(b.shape, lambda i: (0, 0)))
    out_spec = pl.BlockSpec((tb, 1), lambda i: (i, 0))

    flops = 2 * b_pad * sum(DIMS[k] * DIMS[k + 1] for k in range(len(DIMS) - 1))
    bytes_accessed = (x_bf16.size * 2
                      + sum(int(a.size) * a.dtype.itemsize for a in flat)
                      + b_pad * 4)

    out = pl.pallas_call(
        _mlp_kernel,
        out_shape=jax.ShapeDtypeStruct((b_pad, 1), jnp.float32),
        grid_spec=pltpu.PrefetchScalarGridSpec(
            num_scalar_prefetch=0,
            grid=(n_tiles,),
            in_specs=[x_spec] + param_specs,
            out_specs=out_spec,
        ),
        compiler_params=pltpu.CompilerParams(
            # batch tiles are independent -> shard across v7x's 2 TensorCores
            dimension_semantics=("parallel",),
        ),
        cost_estimate=pl.CostEstimate(
            flops=flops, transcendentals=0, bytes_accessed=bytes_accessed),
    )(x_bf16, *flat)

    return out[:B]


def init_params(key):
    """Deterministic init matching nn.Linear shapes (uniform +-1/sqrt(fan_in))."""
    params = []
    for i in range(len(DIMS) - 1):
        fan_in, fan_out = DIMS[i], DIMS[i + 1]
        key, kw, kb = jax.random.split(key, 3)
        bound = 1.0 / (fan_in ** 0.5)
        w = jax.random.uniform(kw, (fan_in, fan_out), jnp.float32, -bound, bound)
        b = jax.random.uniform(kb, (1, fan_out), jnp.float32, -bound, bound)
        params.append((w, b))
    return params


def reference_forward(x, params, *, cast_bf16=True):
    h = x
    for i, (w, b) in enumerate(params):
        if cast_bf16:
            h = jnp.dot(h.astype(jnp.bfloat16), w.astype(jnp.bfloat16),
                        preferred_element_type=jnp.float32) + b
        else:
            h = jnp.dot(h, w, preferred_element_type=jnp.float32) + b
        if i < len(params) - 1:
            h = jnp.maximum(h, 0.0)
    return h


if __name__ == "__main__":
    key = jax.random.PRNGKey(0)
    k_params, k_x = jax.random.split(key)
    params = init_params(k_params)

    # Small-shape check (B=8): single-tile path (TB clamps to 8).
    x_small = jax.random.normal(k_x, (8, DIMS[0]), jnp.float32)
    out_small = jax.block_until_ready(simplenet_forward(x_small, params))
    ref_small = reference_forward(x_small, params, cast_bf16=True)
    assert out_small.shape == (8, 1), out_small.shape
    assert jnp.allclose(out_small, ref_small, atol=2e-3, rtol=2e-3), \
        "mismatch vs bf16 reference (small batch)"

    # Multi-tile + ragged-batch check: B=300, TB=128 -> padded to 384, grid=(3,).
    x_big = jax.random.normal(jax.random.PRNGKey(1), (300, DIMS[0]), jnp.float32)
    out_big = jax.block_until_ready(simplenet_forward(x_big, params, tb=128))
    ref_big = reference_forward(x_big, params, cast_bf16=True)
    assert out_big.shape == (300, 1), out_big.shape
    assert jnp.allclose(out_big, ref_big, atol=2e-3, rtol=2e-3), \
        "mismatch vs bf16 reference (tiled batch)"

    # Sanity vs the pure-f32 PyTorch-equivalent forward (looser: bf16 MXU inputs).
    ref_f32 = reference_forward(x_small, params, cast_bf16=False)
    assert jnp.allclose(out_small, ref_f32, atol=5e-2, rtol=5e-2), \
        "mismatch vs f32 reference"

    print("KERNEL_OK")
</pallas_src>

<mosaic_0001>
module attributes {stable_mosaic.version = 11 : i64} {
  func.func @_mlp_kernel(%arg0: i32, %arg1: memref<8x260xbf16, #tpu.memory_space<vmem>>, %arg2: memref<260x120xbf16, #tpu.memory_space<vmem>>, %arg3: memref<1x120xf32, #tpu.memory_space<vmem>>, %arg4: memref<120x40xbf16, #tpu.memory_space<vmem>>, %arg5: memref<1x40xf32, #tpu.memory_space<vmem>>, %arg6: memref<40x20xbf16, #tpu.memory_space<vmem>>, %arg7: memref<1x20xf32, #tpu.memory_space<vmem>>, %arg8: memref<20x10xbf16, #tpu.memory_space<vmem>>, %arg9: memref<1x10xf32, #tpu.memory_space<vmem>>, %arg10: memref<10x1xbf16, #tpu.memory_space<vmem>>, %arg11: memref<1x1xf32, #tpu.memory_space<vmem>>, %arg12: memref<8x1xf32, #tpu.memory_space<vmem>>) attributes {dimension_semantics = [#tpu.dimension_semantics<parallel>], iteration_bounds = array<i64: 1>, scalar_prefetch = 0 : i64, scratch_operands = 0 : i64, tpu.core_type = #tpu.core_type<tc>, window_params = [{transform_indices = @transform_0, window_bounds = array<i64: 8, 260>}, {pipeline_mode = #tpu.pipeline_mode<synchronous>, transform_indices = @transform_1, window_bounds = array<i64: 260, 120>}, {pipeline_mode = #tpu.pipeline_mode<synchronous>, transform_indices = @transform_2, window_bounds = array<i64: 1, 120>}, {pipeline_mode = #tpu.pipeline_mode<synchronous>, transform_indices = @transform_3, window_bounds = array<i64: 120, 40>}, {pipeline_mode = #tpu.pipeline_mode<synchronous>, transform_indices = @transform_4, window_bounds = array<i64: 1, 40>}, {pipeline_mode = #tpu.pipeline_mode<synchronous>, transform_indices = @transform_5, window_bounds = array<i64: 40, 20>}, {pipeline_mode = #tpu.pipeline_mode<synchronous>, transform_indices = @transform_6, window_bounds = array<i64: 1, 20>}, {pipeline_mode = #tpu.pipeline_mode<synchronous>, transform_indices = @transform_7, window_bounds = array<i64: 20, 10>}, {pipeline_mode = #tpu.pipeline_mode<synchronous>, transform_indices = @transform_8, window_bounds = array<i64: 1, 10>}, {pipeline_mode = #tpu.pipeline_mode<synchronous>, transform_indices = @transform_9, window_bounds = array<i64: 10, 1>}, {pipeline_mode = #tpu.pipeline_mode<synchronous>, transform_indices = @transform_10, window_bounds = array<i64: 1, 1>}, {transform_indices = @transform_11, window_bounds = array<i64: 8, 1>}]} {
    %c0 = arith.constant 0 : index
    %c0_0 = arith.constant 0 : index
    %0 = vector.load %arg1[%c0, %c0_0] : memref<8x260xbf16, #tpu.memory_space<vmem>>, vector<8x260xbf16>
    %c0_1 = arith.constant 0 : index
    %c0_2 = arith.constant 0 : index
    %1 = vector.load %arg2[%c0_1, %c0_2] : memref<260x120xbf16, #tpu.memory_space<vmem>>, vector<260x120xbf16>
    %cst = arith.constant dense<0.000000e+00> : vector<8x120xf32>
    %2 = tpu.matmul %0, %1, %cst {dimension_numbers = #tpu.dot_dimension_numbers<[1], [0], [0], [1], [0, 0, 1, 1], [], []>} : vector<8x260xbf16>, vector<260x120xbf16>, vector<8x120xf32> -> vector<8x120xf32>
    %c0_3 = arith.constant 0 : index
    %c0_4 = arith.constant 0 : index
    %3 = vector.load %arg3[%c0_3, %c0_4] : memref<1x120xf32, #tpu.memory_space<vmem>>, vector<1x120xf32>
    %4 = vector.broadcast %3 : vector<1x120xf32> to vector<8x120xf32>
    %5 = arith.addf %2, %4 : vector<8x120xf32>
    %cst_5 = arith.constant 0.000000e+00 : f32
    %6 = vector.broadcast %cst_5 : f32 to vector<8x120xf32>
    %7 = arith.maximumf %5, %6 : vector<8x120xf32>
    %8 = arith.truncf %7 : vector<8x120xf32> to vector<8x120xbf16>
    %c0_6 = arith.constant 0 : index
    %c0_7 = arith.constant 0 : index
    %9 = vector.load %arg4[%c0_6, %c0_7] : memref<120x40xbf16, #tpu.memory_space<vmem>>, vector<120x40xbf16>
    %cst_8 = arith.constant dense<0.000000e+00> : vector<8x40xf32>
    %10 = tpu.matmul %8, %9, %cst_8 {dimension_numbers = #tpu.dot_dimension_numbers<[1], [0], [0], [1], [0, 0, 1, 1], [], []>} : vector<8x120xbf16>, vector<120x40xbf16>, vector<8x40xf32> -> vector<8x40xf32>
    %c0_9 = arith.constant 0 : index
    %c0_10 = arith.constant 0 : index
    %11 = vector.load %arg5[%c0_9, %c0_10] : memref<1x40xf32, #tpu.memory_space<vmem>>, vector<1x40xf32>
    %12 = vector.broadcast %11 : vector<1x40xf32> to vector<8x40xf32>
    %13 = arith.addf %10, %12 : vector<8x40xf32>
    %cst_11 = arith.constant 0.000000e+00 : f32
    %14 = vector.broadcast %cst_11 : f32 to vector<8x40xf32>
    %15 = arith.maximumf %13, %14 : vector<8x40xf32>
    %16 = arith.truncf %15 : vector<8x40xf32> to vector<8x40xbf16>
    %c0_12 = arith.constant 0 : index
    %c0_13 = arith.constant 0 : index
    %17 = vector.load %arg6[%c0_12, %c0_13] : memref<40x20xbf16, #tpu.memory_space<vmem>>, vector<40x20xbf16>
    %cst_14 = arith.constant dense<0.000000e+00> : vector<8x20xf32>
    %18 = tpu.matmul %16, %17, %cst_14 {dimension_numbers = #tpu.dot_dimension_numbers<[1], [0], [0], [1], [0, 0, 1, 1], [], []>} : vector<8x40xbf16>, vector<40x20xbf16>, vector<8x20xf32> -> vector<8x20xf32>
    %c0_15 = arith.constant 0 : index
    %c0_16 = arith.constant 0 : index
    %19 = vector.load %arg7[%c0_15, %c0_16] : memref<1x20xf32, #tpu.memory_space<vmem>>, vector<1x20xf32>
    %20 = vector.broadcast %19 : vector<1x20xf32> to vector<8x20xf32>
    %21 = arith.addf %18, %20 : vector<8x20xf32>
    %cst_17 = arith.constant 0.000000e+00 : f32
    %22 = vector.broadcast %cst_17 : f32 to vector<8x20xf32>
    %23 = arith.maximumf %21, %22 : vector<8x20xf32>
    %24 = arith.truncf %23 : vector<8x20xf32> to vector<8x20xbf16>
    %c0_18 = arith.constant 0 : index
    %c0_19 = arith.constant 0 : index
    %25 = vector.load %arg8[%c0_18, %c0_19] : memref<20x10xbf16, #tpu.memory_space<vmem>>, vector<20x10xbf16>
    %cst_20 = arith.constant dense<0.000000e+00> : vector<8x10xf32>
    %26 = tpu.matmul %24, %25, %cst_20 {dimension_numbers = #tpu.dot_dimension_numbers<[1], [0], [0], [1], [0, 0, 1, 1], [], []>} : vector<8x20xbf16>, vector<20x10xbf16>, vector<8x10xf32> -> vector<8x10xf32>
    %c0_21 = arith.constant 0 : index
    %c0_22 = arith.constant 0 : index
    %27 = vector.load %arg9[%c0_21, %c0_22] : memref<1x10xf32, #tpu.memory_space<vmem>>, vector<1x10xf32>
    %28 = vector.broadcast %27 : vector<1x10xf32> to vector<8x10xf32>
    %29 = arith.addf %26, %28 : vector<8x10xf32>
    %cst_23 = arith.constant 0.000000e+00 : f32
    %30 = vector.broadcast %cst_23 : f32 to vector<8x10xf32>
    %31 = arith.maximumf %29, %30 : vector<8x10xf32>
    %32 = arith.truncf %31 : vector<8x10xf32> to vector<8x10xbf16>
    %c0_24 = arith.constant 0 : index
    %c0_25 = arith.constant 0 : index
    %33 = vector.load %arg10[%c0_24, %c0_25] : memref<10x1xbf16, #tpu.memory_space<vmem>>, vector<10x1xbf16>
    %cst_26 = arith.constant dense<0.000000e+00> : vector<8x1xf32>
    %34 = tpu.matmul %32, %33, %cst_26 {dimension_numbers = #tpu.dot_dimension_numbers<[1], [0], [0], [1], [0, 0, 1, 1], [], []>} : vector<8x10xbf16>, vector<10x1xbf16>, vector<8x1xf32> -> vector<8x1xf32>
    %c0_27 = arith.constant 0 : index
    %c0_28 = arith.constant 0 : index
    %35 = vector.load %arg11[%c0_27, %c0_28] : memref<1x1xf32, #tpu.memory_space<vmem>>, vector<1x1xf32>
    %36 = vector.broadcast %35 : vector<1x1xf32> to vector<8x1xf32>
    %37 = arith.addf %34, %36 : vector<8x1xf32>
    %c0_29 = arith.constant 0 : index
    %c0_30 = arith.constant 0 : index
    %38 = vector.load %arg12[%c0_29, %c0_30] : memref<8x1xf32, #tpu.memory_space<vmem>>, vector<8x1xf32>
    tpu.vector_store %arg12[%c0_29, %c0_30], %37 {strides = array<i32>} : memref<8x1xf32, #tpu.memory_space<vmem>>, vector<8x1xf32>,
    return
  }
  func.func @transform_0(%arg0: i32) -> (i32, i32) {
    %c0_i32 = arith.constant 0 : i32
    %c0_i32_0 = arith.constant 0 : i32
    return %arg0, %c0_i32 : i32, i32
  }
  func.func @transform_1(%arg0: i32) -> (i32, i32) {
    %c0_i32 = arith.constant 0 : i32
    %c0_i32_0 = arith.constant 0 : i32
    %c0_i32_1 = arith.constant 0 : i32
    return %c0_i32, %c0_i32_0 : i32, i32
  }
  func.func @transform_2(%arg0: i32) -> (i32, i32) {
    %c0_i32 = arith.constant 0 : i32
    %c0_i32_0 = arith.constant 0 : i32
    %c0_i32_1 = arith.constant 0 : i32
    return %c0_i32, %c0_i32_0 : i32, i32
  }
  func.func @transform_3(%arg0: i32) -> (i32, i32) {
    %c0_i32 = arith.constant 0 : i32
    %c0_i32_0 = arith.constant 0 : i32
    %c0_i32_1 = arith.constant 0 : i32
    return %c0_i32, %c0_i32_0 : i32, i32
  }
  func.func @transform_4(%arg0: i32) -> (i32, i32) {
    %c0_i32 = arith.constant 0 : i32
    %c0_i32_0 = arith.constant 0 : i32
    %c0_i32_1 = arith.constant 0 : i32
    return %c0_i32, %c0_i32_0 : i32, i32
  }
  func.func @transform_5(%arg0: i32) -> (i32, i32) {
    %c0_i32 = arith.constant 0 : i32
    %c0_i32_0 = arith.constant 0 : i32
    %c0_i32_1 = arith.constant 0 : i32
    return %c0_i32, %c0_i32_0 : i32, i32
  }
  func.func @transform_6(%arg0: i32) -> (i32, i32) {
    %c0_i32 = arith.constant 0 : i32
    %c0_i32_0 = arith.constant 0 : i32
    %c0_i32_1 = arith.constant 0 : i32
    return %c0_i32, %c0_i32_0 : i32, i32
  }
  func.func @transform_7(%arg0: i32) -> (i32, i32) {
    %c0_i32 = arith.constant 0 : i32
    %c0_i32_0 = arith.constant 0 : i32
    %c0_i32_1 = arith.constant 0 : i32
    return %c0_i32, %c0_i32_0 : i32, i32
  }
  func.func @transform_8(%arg0: i32) -> (i32, i32) {
    %c0_i32 = arith.constant 0 : i32
    %c0_i32_0 = arith.constant 0 : i32
    %c0_i32_1 = arith.constant 0 : i32
    return %c0_i32, %c0_i32_0 : i32, i32
  }
  func.func @transform_9(%arg0: i32) -> (i32, i32) {
    %c0_i32 = arith.constant 0 : i32
    %c0_i32_0 = arith.constant 0 : i32
    %c0_i32_1 = arith.constant 0 : i32
    return %c0_i32, %c0_i32_0 : i32, i32
  }
  func.func @transform_10(%arg0: i32) -> (i32, i32) {
    %c0_i32 = arith.constant 0 : i32
    %c0_i32_0 = arith.constant 0 : i32
    %c0_i32_1 = arith.constant 0 : i32
    return %c0_i32, %c0_i32_0 : i32, i32
  }
  func.func @transform_11(%arg0: i32) -> (i32, i32) {
    %c0_i32 = arith.constant 0 : i32
    %c0_i32_0 = arith.constant 0 : i32
    return %arg0, %c0_i32 : i32, i32
  }
}

</mosaic_0001>

<bundles_post_ra>
// kernel: tpu_custom_call.1
= control target key start
LH: loop header
LB: loop body
LE: loop exit
PB: predicated region body
PF: predicated region fallthrough
CT: control target
= control target key end

     0   :  { %s859_s0 = inlined_call_operand.hbm [shape: bf16[8,260], index: 0, kind: input, shape index: {}]   ;;  %s860_s1 = inlined_call_operand.vmem [shape: bf16[260,120], index: 1, kind: input, shape index: {}]   ;;  %s861_s2 = inlined_call_operand.hbm [shape: f32[1,120], index: 2, kind: input, shape index: {}]   ;;  %s862_s3 = inlined_call_operand.vmem [shape: bf16[120,40], index: 3, kind: input, shape index: {}]   ;;  %s863_s4 = inlined_call_operand.vmem [shape: f32[1,40], index: 4, kind: input, shape index: {}]   ;;  %s864_s5 = inlined_call_operand.vmem [shape: bf16[40,20], index: 5, kind: input, shape index: {}]   ;;  %s865_s6 = inlined_call_operand.vmem [shape: f32[1,20], index: 6, kind: input, shape index: {}]   ;;  %s866_s7 = inlined_call_operand.vmem [shape: bf16[20,10], index: 7, kind: input, shape index: {}]   ;;  %s867_s8 = inlined_call_operand.vmem [shape: f32[1,10], index: 8, kind: input, shape index: {}]   ;;  %s868_s9 = inlined_call_operand.vmem [shape: bf16[10,1], index: 9, kind: input, shape index: {}]   ;;  %s869_s10 = inlined_call_operand.<no memory space> [shape: f32[1,1], index: 10, kind: input, shape index: {}]   ;;  %s870_s11 = inlined_call_operand.vmem [shape: f32[8,1], index: 11, kind: output, shape index: {}]  }
   0x1   :  { %v16_v0 = vstv %s869_s10 }
   0x2   :  { %17 = vst [vmem:[#allocation2] sm:$0x1] %v16_v0 }
   0x3   :  { %18 = vsyncpa [#allocation4], 0  ;;  %s25_s21 = sshll.u32 %s859_s0, 4  ;;  %s26_s21 = int_to_ptr.hbm [resolvable:$true] %s25_s21 }
   0x4   :  { %19 = vsyncpa [#allocation6], 0  ;;  %s676_s22 = smov [#allocation3]   ;;  %s38_s26 = sshll.u32 %s861_s2, 4  ;;  %s39_s26 = int_to_ptr.hbm [resolvable:$true] %s38_s26 }
   0x5   :  { %s27_s23 = sshll.u32 %s676_s22, 4  ;;  %s677_s27 = smov [#allocation5]   ;;  %s28_s23 = int_to_ptr.vmem [resolvable:$true] %s27_s23 }
   0x6   :  { %30 = dma.hbm_to_vmem [thread:$0]  %s26_s21, 192, %s28_s23, [#allocation4]  }
   0x7   :  { %s40_s28 = sshll.u32 %s677_s27, 4  ;;  %s41_s28 = int_to_ptr.vmem [resolvable:$true] %s40_s28 }
   0x8   :  { %43 = dma.hbm_to_vmem [thread:$0]  %s39_s26, 16, %s41_s28, [#allocation6]  }
   0x9   :  { %672 = dma.done.wait [#allocation4], 192  }
   0xa   :  { %673 = vsyncadd [#allocation4], 4294967104 }
   0xb   :  { %674 = dma.done.wait [#allocation6], 16  }
   0xc   :  { %675 = vsyncadd [#allocation6], 4294967280  ;;  %v597_v1 = vld [vmem:[%s860_s1 + $0x38] sm:$0xff]  ;;  %v596_v3 = vld [vmem:[%s860_s1 + $0x30] sm:$0xff]  ;;  %vm221_vm0 = vcmask 1041408   ;;  %vm217_vm1 = vcmask 31744  }
   0xd   :  { %v605_v2 = vld [vmem:[%s860_s1 + $0x78] sm:$0xff]  ;;  %225 = vmatpush.bf16.msra.mxu0 %v597_v1  ;;  %v604_v4 = vld [vmem:[%s860_s1 + $0x70] sm:$0xff]  ;;  %v103_v5 = vld [vmem:[%s860_s1 + $0x80] sm:$0x3]  ;;  %vm334_vm2 = vcmask 1043456   ;;  %vm330_vm3 = vcmask 982016  }
   0xe   :  { %238 = vmatpush.bf16.msra.mxu1 %v605_v2  ;;  %v183_v6 = vunpack.c.l.b16 %v103_v5  ;;  %v70_v7 = vld [vmem:[#allocation3 + $0x8] sm:$0xf]  ;;  %v280_v12 = vld [vmem:[%s862_s3 + $0x38] sm:$0xf]  ;;  %v594_v17 = vld [vmem:[%s860_s1 + $0x20] sm:$0xff]  ;;  %vm377_vm4 = vcmask 326656  }
   0xf   :  { %v112_v8 = vunpack.c.l.b16 %v70_v7  ;;  %v595_v9 = vld [vmem:[%s860_s1 + $0x28] sm:$0xff]  ;;  %v314_v13 = vunpack.c.l.b16 %v280_v12  ;;  %v602_v18 = vld [vmem:[%s860_s1 + $0x60] sm:$0xff]  ;;  %v612_v20 = vld [vmem:[%s862_s3 + $0x30] sm:$0xff]  ;;  %vm452_vm5 = vcmask 1044480   ;;  %vm415_vm6 = vcmask 162816  }
  0x10   :  { %v603_v10 = vld [vmem:[%s860_s1 + $0x68] sm:$0xff]  ;;  %v200_v11 = vpack.c.b16 %v183_v6, %v183_v6  ;;  %v593_v21 = vld [vmem:[%s860_s1 + $0x18] sm:$0xff]  ;;  %v592_v24 = vld [vmem:[%s860_s1 + $0x10] sm:$0xff]  ;;  %vm448_vm7 = vcmask 80896   ;;  %vm469_vm8 = vcmask 7168  }
  0x11   :  { %226 = vmatpush.bf16.msra.mxu0 %v596_v3  ;;  %v115_v15 = vpack.c.b16 %v112_v8, %v112_v8  ;;  %v322_v16 = vpack.c.b16 %v314_v13, %v314_v13  ;;  %v601_v22 = vld [vmem:[%s860_s1 + $0x58] sm:$0xff]  ;;  %v611_v23 = vld [vmem:[%s862_s3 + $0x28] sm:$0xff]  ;;  %v600_v25 = vld [vmem:[%s860_s1 + $0x50] sm:$0xff] }
  0x12   :  { %239 = vmatpush.bf16.msra.mxu1 %v604_v4  ;;  %v223_v14 = vsel %vm221_vm0, %v200_v11, 0  ;;  %v610_v26 = vld [vmem:[%s862_s3 + $0x20] sm:$0xff]  ;;  %v591_v27 = vld [vmem:[%s860_s1 + $0x8] sm:$0xff]  ;;  %v609_v36 = vld [vmem:[%s862_s3 + $0x18] sm:$0xff] }
  0x13   :  { %258 = vmatpush.bf16.msra.mxu2 %v223_v14  ;;  %v336_v19 = vsel %vm334_vm2, %v322_v16, 0  ;;  %v599_v28 = vld [vmem:[%s860_s1 + $0x48] sm:$0xff]  ;;  %v590_v32 = vld [vmem:[%s860_s1] sm:$0xff]  ;;  %v608_v37 = vld [vmem:[%s862_s3 + $0x10] sm:$0xff] }
  0x14   :  { %338 = vmatpush.bf16.msra.mxu3 %v336_v19  ;;  %v69_v29 = vld [vmem:[#allocation3] sm:$0xff]  ;;  %v357_v40 = vld [vmem:[%s864_s5 + $0x10] sm:$0xf]  ;;  %v619_v47 = vld [vmem:[#allocation5] ss:$0 sm:$0xff] }
  0x15   :  { %227 = vmatpush.bf16.msra.mxu0 %v595_v9  ;;  %v110_v30 = vunpack.c.l.b16 %v69_v29  ;;  %v111_v31 = vunpack.c.h.b16 %v69_v29  ;;  %v598_v33 = vld [vmem:[%s860_s1 + $0x40] sm:$0xff]  ;;  %v607_v38 = vld [vmem:[%s862_s3 + $0x8] sm:$0xff]  ;;  %v371_v41 = vunpack.c.l.b16 %v357_v40 }
  0x16   :  { %240 = vmatpush.bf16.msra.mxu1 %v603_v10  ;;  %541 = vmatmul.msk.bf16.vlgmr.msra.gmra.mxu2 %vm217_vm1, %v115_v15  ;;  %v606_v39 = vld [vmem:[%s862_s3] sm:$0xff]  ;;  %v614_v45 = vld [vmem:[%s864_s5 + $0x8] sm:$0xff] }
  0x17   :  { %v113_v34 = vpack.c.b16 %v110_v30, %v110_v30  ;;  %v114_v35 = vpack.c.b16 %v111_v31, %v111_v31  ;;  %v374_v42 = vpack.c.b16 %v371_v41, %v371_v41  ;;  %v401_v57 = vld [vmem:[%s866_s7 + $0x8] sm:$0x3]  ;;  %v613_v61 = vld [vmem:[%s864_s5] sm:$0xff] }
  0x18   :  { %339 = vmatpush.bf16.msra.mxu3 %v612_v20  ;;  %v411_v58 = vunpack.c.l.b16 %v401_v57  ;;  %v615_v62 = vld [vmem:[%s866_s7] sm:$0xff] }
  0x19   :  { %228 = vmatpush.bf16.msra.mxu0 %v594_v17  ;;  %v382_v43 = vsel %vm334_vm2, %v374_v42, 0  ;;  %v620_v63 = vld [vmem:[%s863_s4] ss:$0 sm:$0xff]  ;;  %v616_v6 = vld [vmem:[%s868_s9] sm:$0x10] }
  0x1a   :  { %241 = vmatpush.bf16.msra.mxu1 %v602_v18  ;;  %389 = vmatpush.bf16.msrb.mxu2 %v382_v43  ;;  %v413_v59 = vpack.c.b16 %v411_v58, %v411_v58  ;;  %v587_v5 = vld [vmem:[%s868_s9] sm:$0xf] }
  0x1b   :  { %v588_v7 = vor.u32 %v616_v6, %v587_v5  ;;  %v621_v9 = vld [vmem:[%s865_s6] ss:$0 sm:$0xff] }
  0x1c   :  { %340 = vmatpush.bf16.msra.mxu3 %v611_v23  ;;  %v420_v60 = vsel %vm221_vm0, %v413_v59, 0  ;;  %v622_v15 = vld [vmem:[%s867_s8] ss:$0 sm:$0xff] }
  0x1d   :  { %229 = vmatpush.bf16.msra.mxu0 %v593_v21  ;;  %v454_v8 = vsel %vm452_vm5, %v588_v7, 0  ;;  %v623_v21 = vld [vmem:[#allocation2] ss:$0 sm:$0xff] }
  0x1e   :  { %242 = vmatpush.bf16.msra.mxu1 %v601_v22  ;;  %390 = vmatpush.bf16.msrb.mxu2 %v614_v45 }
  0x20   :  { %341 = vmatpush.bf16.msra.mxu3 %v610_v26 }
  0x21   :  { %230 = vmatpush.bf16.msra.mxu0 %v592_v24 }
  0x22   :  { %243 = vmatpush.bf16.msra.mxu1 %v600_v25  ;;  %391 = vmatpush.bf16.msrb.mxu2 %v613_v61 }
  0x24   :  { %342 = vmatpush.bf16.msra.mxu3 %v609_v36 }
  0x25   :  { %231 = vmatpush.bf16.msra.mxu0 %v591_v27 }
  0x26   :  { %244 = vmatpush.bf16.msra.mxu1 %v599_v28  ;;  %428 = vmatpush.bf16.msra.mxu2 %v420_v60 }
  0x28   :  { %343 = vmatpush.bf16.msra.mxu3 %v608_v37 }
  0x29   :  { %232 = vmatpush.bf16.msra.mxu0 %v590_v32 }
  0x2a   :  { %245 = vmatpush.bf16.msra.mxu1 %v598_v33  ;;  %429 = vmatpush.bf16.msra.mxu2 %v615_v62 }
  0x2c   :  { %233 = vmatmul.bf16.vlgmr.msra.gmra.mxu0 %v113_v34  ;;  %344 = vmatpush.bf16.msra.mxu3 %v607_v38 }
  0x2d   :  { %246 = vmatmul.bf16.vlgmr.msra.gmra.mxu1 %v114_v35  ;;  %463 = vmatpush.bf16.msrb.mxu0 %v454_v8 }
  0x30   :  { %345 = vmatpush.bf16.msra.mxu3 %v606_v39 }
  0x99   :  { %v260_v44 = vpop.f32.mrf.mxu2 }
  0xa1   :  { %v262_v46 = vpop.f32.mrf.mxu2 }
  0xa9   :  { %v234_v48 = vpop.f32.mrf.mxu0 }
  0xaa   :  { %v247_v49 = vpop.f32.mrf.mxu1  ;;  %v235_v50 = vadd.f32 %v619_v47, %v234_v48 }
  0xac   :  { %v248_v51 = vadd.f32 %v247_v49, %v235_v50 }
  0xae   :  { %v261_v52 = vadd.f32 %v260_v44, %v248_v51 }
  0xb0   :  { %v264_v53 = vmax.f32 %v261_v52, 0.0 }
  0xb1   :  { %v236_v54 = vpop.f32.mrf.mxu0 }
  0xb2   :  { %v249_v55 = vpop.f32.mrf.mxu1  ;;  %v265_v56 = vpack.c.bf16 %v264_v53, %v264_v53 }
  0xb4   :  { %570 = vmatmul.msk.bf16.vlgmr.msra.gmra.mxu3 %vm330_vm3, %v265_v56 }
 0x137   :  { %v347_v0 = vpop.f32.mrf.mxu3 }
 0x138   :  { %v348_v1 = vadd.f32 %v620_v63, %v347_v0 }
 0x13a   :  { %v351_v2 = vmax.f32 %v348_v1, 0.0 }
 0x13c   :  { %v352_v3 = vpack.c.bf16 %v351_v2, %v351_v2 }
 0x13e   :  { %579 = vmatmul.msk.bf16.vlgmr.msrb.gmra.mxu2 %vm377_vm4, %v352_v3 }
 0x13f   :  { %v349_v4 = vpop.f32.mrf.mxu3 }
 0x1c1   :  { %v393_v10 = vpop.f32.mrf.mxu2 }
 0x1c2   :  { %v394_v11 = vadd.f32 %v621_v9, %v393_v10 }
 0x1c4   :  { %v397_v12 = vmax.f32 %v394_v11, 0.0 }
 0x1c6   :  { %v398_v13 = vpack.c.bf16 %v397_v12, %v397_v12 }
 0x1c8   :  { %584 = vmatmul.msk.bf16.vlgmr.msra.gmra.mxu2 %vm415_vm6, %v398_v13 }
 0x1c9   :  { %v395_v14 = vpop.f32.mrf.mxu2 }
 0x24b   :  { %v431_v16 = vpop.f32.mrf.mxu2 }
 0x24c   :  { %v432_v17 = vadd.f32 %v622_v15, %v431_v16 }
 0x24e   :  { %v435_v18 = vmax.f32 %v432_v17, 0.0 }
 0x250   :  { %v436_v19 = vpack.c.bf16 %v435_v18, %v435_v18 }
 0x252   :  { %589 = vmatmul.msk.bf16.vlgmr.msrb.gmra.mxu0 %vm448_vm7, %v436_v19 }
 0x253   :  { %v433_v20 = vpop.f32.mrf.mxu2 }
 0x2cf   :  { %v465_v22 = vpop.f32.mrf.mxu0 }
 0x2d0   :  { %v466_v23 = vadd.f32 %v623_v21, %v465_v22 }
 0x2d2   :  { %470 = vst.msk [vmem:[%s870_s11] sm:$0xff] %vm469_vm8, %v466_v23 }
 0x2d7   :  { %v467_v24 = vpop.f32.mrf.mxu0 }
 0x2d8   :  { %475 = vsyncpa [#allocation4], 1 }
 0x2d9   :  { %476 = vsyncpa [#allocation6], 1 }

</bundles_post_ra>
